<compile_context>
chip_gen: v5e
topology: v5e:2x2
jax: 0.10.0
libtpu: 0.0.40
codegen_flags: <defaults>
</compile_context>

<pallas_src>
import jax
import jax.numpy as jnp
from jax.experimental import pallas as pl
from jax.experimental.pallas import tpu as pltpu


def _residual_dwconv_bn_kernel(w_ref, b_ref, x_ref, o_ref):
    # w_ref : VMEM (9, C)  f32      BN-folded depthwise 3x3 weights, tap-major (ky*3+kx)
    # b_ref : VMEM (1, C)  f32      folded BN bias
    # x_ref : VMEM (1, H, W, C)     full input image (block index ignores the t axis,
    #                               so it stays resident across row tiles)
    # o_ref : VMEM (1, TH, W, C)    output row tile
    TH = o_ref.shape[1]
    H = x_ref.shape[1]
    W = o_ref.shape[2]
    C = o_ref.shape[3]

    t = pl.program_id(1)
    r0 = pl.multiple_of(t * TH, TH)

    # ---- gather the (TH+2)-row slab with a 1-row zero halo at image top/bottom ----
    mid = x_ref[0, pl.ds(r0, TH)]                                    # (TH, W, C) native dtype
    prev_row = x_ref[0, pl.ds(jnp.maximum(r0 - 1, 0), 1)]            # (1, W, C)
    next_row = x_ref[0, pl.ds(jnp.minimum(r0 + TH, H - 1), 1)]       # (1, W, C)
    zero_row = jnp.zeros_like(prev_row)
    prev_row = jnp.where(r0 > 0, prev_row, zero_row)                 # zero halo at image top
    next_row = jnp.where(r0 + TH < H, next_row, zero_row)            # zero halo at image bottom
    slab = jnp.concatenate([prev_row, mid, next_row], axis=0)        # (TH+2, W, C)

    # ---- column-shifted variants via XLU roll; mask the wrapped edge column ----
    col = jax.lax.broadcasted_iota(jnp.int32, slab.shape, dimension=1)
    zeros = jnp.zeros_like(slab)
    v_left = jnp.where(col >= 1, pltpu.roll(slab, 1, axis=1), zeros)           # src col w-1
    v_right = jnp.where(col <= W - 2, pltpu.roll(slab, W - 1, axis=1), zeros)  # src col w+1
    variants = (v_left, slab, v_right)                               # kx = 0, 1, 2

    # ---- 9-tap FMA into a small per-tile f32 accumulator ----
    # Residual + folded BN bias as the accumulator init (saves a final pass).
    bias = b_ref[0].reshape(1, 1, C)
    acc = slab[1:TH + 1].astype(jnp.float32) + bias
    for ky in range(3):
        for kx in range(3):
            w = w_ref[ky * 3 + kx].reshape(1, 1, C)
            acc = acc + variants[kx][ky:ky + TH].astype(jnp.float32) * w

    o_ref[0] = acc.astype(o_ref.dtype)


def residual_dwconv_bn_nhwc(x_nhwc, conv_w, bn_gamma, bn_beta, bn_mean, bn_var,
                            eps=1e-5, row_tile=8):
    """NHWC entry point (the real hot path). x_nhwc: (N, H, W, C); conv_w: (C, 1, 3, 3)."""
    N, H, W, C = x_nhwc.shape

    # Fold BatchNorm (eval mode) into the depthwise conv weights / bias (glue, not hot path).
    scale = (bn_gamma / jnp.sqrt(bn_var + eps)).astype(jnp.float32)          # (C,)
    w_fused = conv_w[:, 0].astype(jnp.float32) * scale[:, None, None]        # (C, 3, 3)
    w_fused = jnp.transpose(w_fused, (1, 2, 0)).reshape(9, C)                # (9, C), tap-major, lane-dense
    b_fused = (bn_beta - bn_mean * scale).astype(jnp.float32).reshape(1, C)

    # Row-tile size: largest of {row_tile, 8, 4, 2, 1} that divides H.
    th = next(t for t in (row_tile, 8, 4, 2, 1) if t <= H and H % t == 0)
    n_row_tiles = H // th

    # Explicit VMEM budget: double-buffered image + output tiles + weights, capped for v7x.
    x_bytes = H * W * C * x_nhwc.dtype.itemsize
    tile_bytes = th * W * C * max(x_nhwc.dtype.itemsize, 4)
    vmem_limit = int(min(max(2 * x_bytes + 4 * tile_bytes + (2 << 20), 32 << 20), 64 << 20))

    return pl.pallas_call(
        _residual_dwconv_bn_kernel,
        out_shape=jax.ShapeDtypeStruct((N, H, W, C), x_nhwc.dtype),
        grid_spec=pltpu.PrefetchScalarGridSpec(
            num_scalar_prefetch=0,
            grid=(N, n_row_tiles),
            in_specs=[
                pl.BlockSpec((9, C), lambda n, t: (0, 0)),               # weights (resident)
                pl.BlockSpec((1, C), lambda n, t: (0, 0)),               # bias (resident)
                pl.BlockSpec((1, H, W, C), lambda n, t: (n, 0, 0, 0)),   # full image, fetched once per n
            ],
            out_specs=pl.BlockSpec((1, th, W, C), lambda n, t: (n, t, 0, 0)),
        ),
        compiler_params=pltpu.CompilerParams(
            dimension_semantics=("parallel", "parallel"),
            vmem_limit_bytes=vmem_limit,
        ),
    )(w_fused, b_fused, x_nhwc)


def residual_dwconv_bn(x, conv_w, bn_gamma, bn_beta, bn_mean, bn_var, eps=1e-5):
    """NCHW convenience wrapper matching the PyTorch interface.

    The two transposes below are demo glue only; in the SHViT model the activations
    should be kept NHWC across the block so no transpose HBM traffic is paid.
    """
    out_nhwc = residual_dwconv_bn_nhwc(
        jnp.transpose(x, (0, 2, 3, 1)), conv_w, bn_gamma, bn_beta, bn_mean, bn_var, eps)
    return jnp.transpose(out_nhwc, (0, 3, 1, 2))


def _reference(x, conv_w, bn_gamma, bn_beta, bn_mean, bn_var, eps=1e-5):
    C = x.shape[1]
    y = jax.lax.conv_general_dilated(
        x, conv_w, window_strides=(1, 1), padding=((1, 1), (1, 1)),
        dimension_numbers=('NCHW', 'OIHW', 'NCHW'), feature_group_count=C)
    scale = bn_gamma / jnp.sqrt(bn_var + eps)
    y = (y - bn_mean[None, :, None, None]) * scale[None, :, None, None] \
        + bn_beta[None, :, None, None]
    return x + y


if __name__ == "__main__":
    N, C, H, W = 2, 4, 16, 16
    key = jax.random.PRNGKey(0)
    k_x, k_w, k_m, k_v = jax.random.split(key, 4)

    x = jax.random.normal(k_x, (N, C, H, W), dtype=jnp.float32)
    # Depthwise conv weight: (out=C, in/groups=1, 3, 3), no bias.
    conv_w = jax.random.normal(k_w, (C, 1, 3, 3), dtype=jnp.float32) * 0.1
    # BatchNorm2d params per __init__: weight=1 (bn_weight_init=1), bias=0;
    # deterministic running stats.
    bn_gamma = jnp.ones((C,), jnp.float32)
    bn_beta = jnp.zeros((C,), jnp.float32)
    bn_mean = jax.random.normal(k_m, (C,), dtype=jnp.float32) * 0.05
    bn_var = jax.random.uniform(k_v, (C,), dtype=jnp.float32, minval=0.5, maxval=1.5)

    out = jax.block_until_ready(
        residual_dwconv_bn(x, conv_w, bn_gamma, bn_beta, bn_mean, bn_var))
    ref = jax.block_until_ready(
        _reference(x, conv_w, bn_gamma, bn_beta, bn_mean, bn_var))

    assert out.shape == (N, C, H, W)
    assert jnp.allclose(out, ref, atol=1e-5, rtol=1e-5), "mismatch vs reference"
    print("KERNEL_OK")
</pallas_src>

<mosaic_0001>
module attributes {stable_mosaic.version = 11 : i64} {
  func.func @_residual_dwconv_bn_kernel(%arg0: i32, %arg1: i32, %arg2: memref<9x4xf32, #tpu.memory_space<vmem>>, %arg3: memref<1x4xf32, #tpu.memory_space<vmem>>, %arg4: memref<1x16x16x4xf32, #tpu.memory_space<vmem>>, %arg5: memref<1x8x16x4xf32, #tpu.memory_space<vmem>>) attributes {dimension_semantics = [#tpu.dimension_semantics<parallel>, #tpu.dimension_semantics<parallel>], iteration_bounds = array<i64: 2, 2>, scalar_prefetch = 0 : i64, scratch_operands = 0 : i64, tpu.core_type = #tpu.core_type<tc>, window_params = [{pipeline_mode = #tpu.pipeline_mode<synchronous>, transform_indices = @transform_0, window_bounds = array<i64: 9, 4>}, {pipeline_mode = #tpu.pipeline_mode<synchronous>, transform_indices = @transform_1, window_bounds = array<i64: 1, 4>}, {transform_indices = @transform_2, window_bounds = array<i64: 1, 16, 16, 4>}, {transform_indices = @transform_3, window_bounds = array<i64: 1, 8, 16, 4>}]} {
    %c8_i32 = arith.constant 8 : i32
    %0 = arith.muli %arg1, %c8_i32 : i32
    %1 = tpu.assume_multiple %0, 8 : i32
    %c0 = arith.constant 0 : index
    %2 = arith.index_cast %1 : i32 to index
    %c0_0 = arith.constant 0 : index
    %c0_1 = arith.constant 0 : index
    %3 = vector.load %arg4[%c0, %2, %c0_0, %c0_1] : memref<1x16x16x4xf32, #tpu.memory_space<vmem>>, vector<1x8x16x4xf32>
    %4 = vector.shape_cast %3 : vector<1x8x16x4xf32> to vector<8x16x4xf32>
    %c1_i32 = arith.constant 1 : i32
    %5 = arith.subi %1, %c1_i32 : i32
    %c0_i32 = arith.constant 0 : i32
    %6 = arith.maxsi %5, %c0_i32 : i32
    %c0_2 = arith.constant 0 : index
    %7 = arith.index_cast %6 : i32 to index
    %c0_3 = arith.constant 0 : index
    %c0_4 = arith.constant 0 : index
    %8 = vector.load %arg4[%c0_2, %7, %c0_3, %c0_4] : memref<1x16x16x4xf32, #tpu.memory_space<vmem>>, vector<1x1x16x4xf32>
    %9 = vector.shape_cast %8 : vector<1x1x16x4xf32> to vector<1x16x4xf32>
    %c8_i32_5 = arith.constant 8 : i32
    %10 = arith.addi %1, %c8_i32_5 : i32
    %c15_i32 = arith.constant 15 : i32
    %11 = arith.minsi %10, %c15_i32 : i32
    %c0_6 = arith.constant 0 : index
    %12 = arith.index_cast %11 : i32 to index
    %c0_7 = arith.constant 0 : index
    %c0_8 = arith.constant 0 : index
    %13 = vector.load %arg4[%c0_6, %12, %c0_7, %c0_8] : memref<1x16x16x4xf32, #tpu.memory_space<vmem>>, vector<1x1x16x4xf32>
    %14 = vector.shape_cast %13 : vector<1x1x16x4xf32> to vector<1x16x4xf32>
    %cst = arith.constant 0.000000e+00 : f32
    %15 = vector.broadcast %cst : f32 to vector<1x16x4xf32>
    %c0_i32_9 = arith.constant 0 : i32
    %16 = arith.cmpi sgt, %1, %c0_i32_9 : i32
    %17 = arith.select %16, %9, %15 : vector<1x16x4xf32>
    %c8_i32_10 = arith.constant 8 : i32
    %18 = arith.addi %1, %c8_i32_10 : i32
    %c16_i32 = arith.constant 16 : i32
    %19 = arith.cmpi slt, %18, %c16_i32 : i32
    %20 = arith.select %19, %14, %15 : vector<1x16x4xf32>
    %21 = tpu.concatenate %17, %4, %20 in 0 : vector<1x16x4xf32>, vector<8x16x4xf32>, vector<1x16x4xf32> -> vector<10x16x4xf32>
    %22 = tpu.iota {dimensions = array<i32: 1>} : vector<10x16x4xi32>
    %cst_11 = arith.constant 0.000000e+00 : f32
    %23 = vector.broadcast %cst_11 : f32 to vector<10x16x4xf32>
    %c1_i32_12 = arith.constant 1 : i32
    %24 = vector.broadcast %c1_i32_12 : i32 to vector<10x16x4xi32>
    %25 = arith.cmpi sge, %22, %24 : vector<10x16x4xi32>
    %c1_i32_13 = arith.constant 1 : i32
    %26 = tpu.dynamic_rotate %21 by %c1_i32_13 dim 1 : vector<10x16x4xf32>, i32 -> vector<10x16x4xf32>
    %27 = arith.select %25, %26, %23 : vector<10x16x4xi1>, vector<10x16x4xf32>
    %c14_i32 = arith.constant 14 : i32
    %28 = vector.broadcast %c14_i32 : i32 to vector<10x16x4xi32>
    %29 = arith.cmpi sle, %22, %28 : vector<10x16x4xi32>
    %c15_i32_14 = arith.constant 15 : i32
    %30 = tpu.dynamic_rotate %21 by %c15_i32_14 dim 1 : vector<10x16x4xf32>, i32 -> vector<10x16x4xf32>
    %31 = arith.select %29, %30, %23 : vector<10x16x4xi1>, vector<10x16x4xf32>
    %c0_15 = arith.constant 0 : index
    %c0_16 = arith.constant 0 : index
    %32 = vector.load %arg3[%c0_15, %c0_16] : memref<1x4xf32, #tpu.memory_space<vmem>>, vector<1x4xf32>
    %33 = vector.shape_cast %32 : vector<1x4xf32> to vector<4xf32>
    %34 = vector.shape_cast %33 : vector<4xf32> to vector<1x1x4xf32>
    %35 = vector.extract_strided_slice %21 {offsets = [1, 0, 0], sizes = [8, 16, 4], strides = [1, 1, 1]} : vector<10x16x4xf32> to vector<8x16x4xf32>
    %36 = vector.broadcast %34 : vector<1x1x4xf32> to vector<8x16x4xf32>
    %37 = arith.addf %35, %36 : vector<8x16x4xf32>
    %c0_17 = arith.constant 0 : index
    %c0_18 = arith.constant 0 : index
    %38 = vector.load %arg2[%c0_17, %c0_18] : memref<9x4xf32, #tpu.memory_space<vmem>>, vector<1x4xf32>
    %39 = vector.shape_cast %38 : vector<1x4xf32> to vector<4xf32>
    %40 = vector.shape_cast %39 : vector<4xf32> to vector<1x1x4xf32>
    %41 = vector.extract_strided_slice %27 {offsets = [0, 0, 0], sizes = [8, 16, 4], strides = [1, 1, 1]} : vector<10x16x4xf32> to vector<8x16x4xf32>
    %42 = vector.broadcast %40 : vector<1x1x4xf32> to vector<8x16x4xf32>
    %43 = arith.mulf %41, %42 : vector<8x16x4xf32>
    %44 = arith.addf %37, %43 : vector<8x16x4xf32>
    %c1 = arith.constant 1 : index
    %c0_19 = arith.constant 0 : index
    %45 = vector.load %arg2[%c1, %c0_19] : memref<9x4xf32, #tpu.memory_space<vmem>>, vector<1x4xf32>
    %46 = vector.shape_cast %45 : vector<1x4xf32> to vector<4xf32>
    %47 = vector.shape_cast %46 : vector<4xf32> to vector<1x1x4xf32>
    %48 = vector.extract_strided_slice %21 {offsets = [0, 0, 0], sizes = [8, 16, 4], strides = [1, 1, 1]} : vector<10x16x4xf32> to vector<8x16x4xf32>
    %49 = vector.broadcast %47 : vector<1x1x4xf32> to vector<8x16x4xf32>
    %50 = arith.mulf %48, %49 : vector<8x16x4xf32>
    %51 = arith.addf %44, %50 : vector<8x16x4xf32>
    %c2 = arith.constant 2 : index
    %c0_20 = arith.constant 0 : index
    %52 = vector.load %arg2[%c2, %c0_20] : memref<9x4xf32, #tpu.memory_space<vmem>>, vector<1x4xf32>
    %53 = vector.shape_cast %52 : vector<1x4xf32> to vector<4xf32>
    %54 = vector.shape_cast %53 : vector<4xf32> to vector<1x1x4xf32>
    %55 = vector.extract_strided_slice %31 {offsets = [0, 0, 0], sizes = [8, 16, 4], strides = [1, 1, 1]} : vector<10x16x4xf32> to vector<8x16x4xf32>
    %56 = vector.broadcast %54 : vector<1x1x4xf32> to vector<8x16x4xf32>
    %57 = arith.mulf %55, %56 : vector<8x16x4xf32>
    %58 = arith.addf %51, %57 : vector<8x16x4xf32>
    %c3 = arith.constant 3 : index
    %c0_21 = arith.constant 0 : index
    %59 = vector.load %arg2[%c3, %c0_21] : memref<9x4xf32, #tpu.memory_space<vmem>>, vector<1x4xf32>
    %60 = vector.shape_cast %59 : vector<1x4xf32> to vector<4xf32>
    %61 = vector.shape_cast %60 : vector<4xf32> to vector<1x1x4xf32>
    %62 = vector.extract_strided_slice %27 {offsets = [1, 0, 0], sizes = [8, 16, 4], strides = [1, 1, 1]} : vector<10x16x4xf32> to vector<8x16x4xf32>
    %63 = vector.broadcast %61 : vector<1x1x4xf32> to vector<8x16x4xf32>
    %64 = arith.mulf %62, %63 : vector<8x16x4xf32>
    %65 = arith.addf %58, %64 : vector<8x16x4xf32>
    %c4 = arith.constant 4 : index
    %c0_22 = arith.constant 0 : index
    %66 = vector.load %arg2[%c4, %c0_22] : memref<9x4xf32, #tpu.memory_space<vmem>>, vector<1x4xf32>
    %67 = vector.shape_cast %66 : vector<1x4xf32> to vector<4xf32>
    %68 = vector.shape_cast %67 : vector<4xf32> to vector<1x1x4xf32>
    %69 = vector.extract_strided_slice %21 {offsets = [1, 0, 0], sizes = [8, 16, 4], strides = [1, 1, 1]} : vector<10x16x4xf32> to vector<8x16x4xf32>
    %70 = vector.broadcast %68 : vector<1x1x4xf32> to vector<8x16x4xf32>
    %71 = arith.mulf %69, %70 : vector<8x16x4xf32>
    %72 = arith.addf %65, %71 : vector<8x16x4xf32>
    %c5 = arith.constant 5 : index
    %c0_23 = arith.constant 0 : index
    %73 = vector.load %arg2[%c5, %c0_23] : memref<9x4xf32, #tpu.memory_space<vmem>>, vector<1x4xf32>
    %74 = vector.shape_cast %73 : vector<1x4xf32> to vector<4xf32>
    %75 = vector.shape_cast %74 : vector<4xf32> to vector<1x1x4xf32>
    %76 = vector.extract_strided_slice %31 {offsets = [1, 0, 0], sizes = [8, 16, 4], strides = [1, 1, 1]} : vector<10x16x4xf32> to vector<8x16x4xf32>
    %77 = vector.broadcast %75 : vector<1x1x4xf32> to vector<8x16x4xf32>
    %78 = arith.mulf %76, %77 : vector<8x16x4xf32>
    %79 = arith.addf %72, %78 : vector<8x16x4xf32>
    %c6 = arith.constant 6 : index
    %c0_24 = arith.constant 0 : index
    %80 = vector.load %arg2[%c6, %c0_24] : memref<9x4xf32, #tpu.memory_space<vmem>>, vector<1x4xf32>
    %81 = vector.shape_cast %80 : vector<1x4xf32> to vector<4xf32>
    %82 = vector.shape_cast %81 : vector<4xf32> to vector<1x1x4xf32>
    %83 = vector.extract_strided_slice %27 {offsets = [2, 0, 0], sizes = [8, 16, 4], strides = [1, 1, 1]} : vector<10x16x4xf32> to vector<8x16x4xf32>
    %84 = vector.broadcast %82 : vector<1x1x4xf32> to vector<8x16x4xf32>
    %85 = arith.mulf %83, %84 : vector<8x16x4xf32>
    %86 = arith.addf %79, %85 : vector<8x16x4xf32>
    %c7 = arith.constant 7 : index
    %c0_25 = arith.constant 0 : index
    %87 = vector.load %arg2[%c7, %c0_25] : memref<9x4xf32, #tpu.memory_space<vmem>>, vector<1x4xf32>
    %88 = vector.shape_cast %87 : vector<1x4xf32> to vector<4xf32>
    %89 = vector.shape_cast %88 : vector<4xf32> to vector<1x1x4xf32>
    %90 = vector.extract_strided_slice %21 {offsets = [2, 0, 0], sizes = [8, 16, 4], strides = [1, 1, 1]} : vector<10x16x4xf32> to vector<8x16x4xf32>
    %91 = vector.broadcast %89 : vector<1x1x4xf32> to vector<8x16x4xf32>
    %92 = arith.mulf %90, %91 : vector<8x16x4xf32>
    %93 = arith.addf %86, %92 : vector<8x16x4xf32>
    %c8 = arith.constant 8 : index
    %c0_26 = arith.constant 0 : index
    %94 = vector.load %arg2[%c8, %c0_26] : memref<9x4xf32, #tpu.memory_space<vmem>>, vector<1x4xf32>
    %95 = vector.shape_cast %94 : vector<1x4xf32> to vector<4xf32>
    %96 = vector.shape_cast %95 : vector<4xf32> to vector<1x1x4xf32>
    %97 = vector.extract_strided_slice %31 {offsets = [2, 0, 0], sizes = [8, 16, 4], strides = [1, 1, 1]} : vector<10x16x4xf32> to vector<8x16x4xf32>
    %98 = vector.broadcast %96 : vector<1x1x4xf32> to vector<8x16x4xf32>
    %99 = arith.mulf %97, %98 : vector<8x16x4xf32>
    %100 = arith.addf %93, %99 : vector<8x16x4xf32>
    %c0_27 = arith.constant 0 : index
    %c0_28 = arith.constant 0 : index
    %c0_29 = arith.constant 0 : index
    %c0_30 = arith.constant 0 : index
    %101 = vector.load %arg5[%c0_27, %c0_28, %c0_29, %c0_30] : memref<1x8x16x4xf32, #tpu.memory_space<vmem>>, vector<1x8x16x4xf32>
    %102 = vector.shape_cast %101 : vector<1x8x16x4xf32> to vector<8x16x4xf32>
    %103 = vector.shape_cast %100 : vector<8x16x4xf32> to vector<1x8x16x4xf32>
    tpu.vector_store %arg5[%c0_27, %c0_28, %c0_29, %c0_30], %103 {strides = array<i32>} : memref<1x8x16x4xf32, #tpu.memory_space<vmem>>, vector<1x8x16x4xf32>,
    return
  }
  func.func @transform_0(%arg0: i32, %arg1: i32) -> (i32, i32) {
    %c0_i32 = arith.constant 0 : i32
    %c0_i32_0 = arith.constant 0 : i32
    %c0_i32_1 = arith.constant 0 : i32
    return %c0_i32, %c0_i32_0 : i32, i32
  }
  func.func @transform_1(%arg0: i32, %arg1: i32) -> (i32, i32) {
    %c0_i32 = arith.constant 0 : i32
    %c0_i32_0 = arith.constant 0 : i32
    %c0_i32_1 = arith.constant 0 : i32
    return %c0_i32, %c0_i32_0 : i32, i32
  }
  func.func @transform_2(%arg0: i32, %arg1: i32) -> (i32, i32, i32, i32) {
    %c0_i32 = arith.constant 0 : i32
    %c0_i32_0 = arith.constant 0 : i32
    %c0_i32_1 = arith.constant 0 : i32
    %c0_i32_2 = arith.constant 0 : i32
    return %arg0, %c0_i32, %c0_i32_0, %c0_i32_1 : i32, i32, i32, i32
  }
  func.func @transform_3(%arg0: i32, %arg1: i32) -> (i32, i32, i32, i32) {
    %c0_i32 = arith.constant 0 : i32
    %c0_i32_0 = arith.constant 0 : i32
    %c0_i32_1 = arith.constant 0 : i32
    return %arg0, %arg1, %c0_i32, %c0_i32_0 : i32, i32, i32, i32
  }
}

</mosaic_0001>

<bundles_post_ra>
// kernel: tpu_custom_call.1
= control target key start
LH: loop header
LB: loop body
LE: loop exit
PB: predicated region body
PF: predicated region fallthrough
CT: control target
= control target key end

     0   :  { %s951_s12 = smov 0   ;;  %s953_s13 = smov 0   ;;  %s1642_s0 = inlined_call_operand.vmem [shape: f32[9,4], index: 0, kind: input, shape index: {}]   ;;  %s1643_s1 = inlined_call_operand.vmem [shape: f32[1,4], index: 1, kind: input, shape index: {}]   ;;  %s1644_s2 = inlined_call_operand.vmem [shape: f32[2,16,16,4], index: 2, kind: input, shape index: {}]   ;;  %s1645_s3 = inlined_call_operand.vmem [shape: f32[2,16,16,4], index: 3, kind: output, shape index: {}]  }
   0x1   :  { %s955_s14 = smov 0   ;;  %s957_s15 = smov 0  }
   0x2   :  { %s959_s16 = smov 0  }
   0x3 LB: > { %s22_s17 = sadd.s32 1, %s921_s14  ;;  %s25_s18 = sadd.s32 1, %s925_s15  ;;  %s929_s16 = sphi %s959_s16, %s13_s16   ;;  %s925_s15 = sphi %s957_s15, %s1649_s15   ;;  %s921_s14 = sphi %s955_s14, %s1648_s14   ;;  %s917_s13 = sphi %s953_s13, %s1647_s13   ;;  %s913_s12 = sphi %s951_s12, %s1646_s12  }
   0x4   : > { %p23_p0 = scmp.ge.s32.totalorder %s22_s17, 2  ;;  %p813_p1 = scmp.ge.s32.totalorder %s929_s16, 1 }
   0x5   : > { %p151_p2 = scmp.lt.s32.totalorder %s929_s16, 5 }
   0x6   : > { %s1651_s17 = smov (%p23_p0, %s22_s17), 0  ;;  %s1653_s18 = smov (!%p23_p0, %s25_s18), %s925_s15 }
   0x7   : > { %p152_p3 = pnand %p813_p1, %p151_p2  ;;  %p27_p4 = scmp.ge.s32.totalorder %s1653_s18, 2 }
   0x8   : > { %p180_p5 = scmp.lt.s32.totalorder (!%p152_p3), %s917_s13, 1  ;;  %s828_s19 = sshll.u32 (!%p152_p3), %s913_s12, 7 }
   0x9   : > { %s1655_s18 = smov (%p27_p4, %s1653_s18), 0  ;;  %155 = sbr.rel (%p152_p3) target bundleno = 129 (0x81), region = 32 }
   0xa   : > { %s986_s21 = sshll.u32 (!%p152_p3), %s913_s12, 3 }
   0xb   : > { %s822_s30 = sadd.s32 (!%p152_p3), 4294967295, %s986_s21  ;;  %p229_p7 = scmp.gt.s32.totalorder (!%p152_p3), %s986_s21, 0 }
   0xc   : > { %p216_p6 = scmp.gt.s32.totalorder (!%p152_p3), %s822_s30, 0  ;;  %s1113_s4 = sadd.s32 (!%p152_p3), 8, %s986_s21 }
   0xd   : > { %p223_p8 = scmp.lt.s32.totalorder (!%p152_p3), %s1113_s4, 15  ;;  %p188_p9 = scmp.lt.s32.totalorder (!%p152_p3), %s986_s21, 15 }
   0xe   : > { %v241_v0 = vlaneseq  ;;  %s1657_s13 = smov (!%p180_p5, %s917_s13), 1  ;;  %v999_v3 = vld [vmem:[%s1643_s1] ss:$0 sm:$0xff]  ;;  %v1008_v4 = vld [vmem:[%s1642_s0 + $0x1] ss:$0 sm:$0xff]  ;;  %s1659_s30 = smov (!%p216_p6, %s822_s30), 0 }
   0xf   : > { %s827_s20 = sshll.u32 %s1657_s13, 8  ;;  %v1025_v8 = vld [vmem:[%s1642_s0] ss:$0 sm:$0xff]  ;;  %v1030_v9 = vld [vmem:[%s1642_s0 + $0x4] ss:$0 sm:$0xff]  ;;  %s823_s23 = sshll.u32 %s1659_s30, 4 }
  0x10   : > { %v983_v1 = vshrl.u32 %v241_v0, 7  ;;  %s994_s24 = scalar_lea.vmem %s1644_s2, %s827_s20  ;;  %v1041_v14 = vld [vmem:[%s1642_s0 + $0x2] ss:$0 sm:$0xff]  ;;  %v1046_v15 = vld [vmem:[%s1642_s0 + $0x3] ss:$0 sm:$0xff]  ;;  %s1661_s21 = smov (!%p188_p9, %s986_s21), 15 }
  0x11   : > { %s1002_s27 = scalar_lea.vmem %s994_s24, %s828_s19  ;;  %v1063_v23 = vld [vmem:[%s1642_s0 + $0x5] ss:$0 sm:$0xff]  ;;  %v1076_v28 = vld [vmem:[%s1642_s0 + $0x6] ss:$0 sm:$0xff]  ;;  %v1089_v33 = vld [vmem:[%s1642_s0 + $0x7] ss:$0 sm:$0xff]  ;;  %s219_s28 = scalar_lea.vmem %s994_s24, %s823_s23 }
  0x12   : > { %v989_v2 = vadd.s32 8, %v983_v1  ;;  %vm244_vm0 = vcmp.ge.s32.totalorder %v983_v1, 1  ;;  %v1011_v5 = vld [vmem:[%s1002_s27] sm:$0xff]  ;;  %v1014_v6 = vld [vmem:[%s1002_s27 + $0x8] sm:$0xff]  ;;  %v1017_v7 = vld [vmem:[%s1002_s27 + $0x10] sm:$0xff]  ;;  %vm266_vm1 = vcmp.lt.s32.totalorder %v983_v1, 1 }
  0x13   : > { %vm329_vm2 = vcmp.lt.s32.totalorder %v983_v1, 7  ;;  %v1033_v10 = vld [vmem:[%s1002_s27 + $0x18] sm:$0xff]  ;;  %v247_v11 = vrot.slane %v1011_v5, 7  ;;  %v248_v12 = vrot.slane %v1017_v7, 7  ;;  %v257_v13 = vrot.slane %v1014_v6, 7  ;;  %v1050_v16 = vld [vmem:[%s1002_s27 + $0x20] sm:$0xff] }
  0x14   : > { %vm308_vm3 = vcmp.le.s32.totalorder %v989_v2, 14  ;;  %v258_v17 = vrot.slane %v1033_v10, 7  ;;  %v310_v18 = vrot.slane %v1011_v5, 1  ;;  %v311_v19 = vrot.slane %v1017_v7, 1  ;;  %v1103_v37 = vld [vmem:[%s1642_s0 + $0x8] ss:$0 sm:$0xff] }
  0x15   : > { %v320_v20 = vrot.slane %v1014_v6, 1  ;;  %v278_v21 = vsel %vm266_vm1, %v257_v13, %v247_v11  ;;  %v321_v22 = vrot.slane %v1033_v10, 1  ;;  %v378_v27 = vadd.f32 %v999_v3, %v1050_v16  ;;  %s870_s5 = scalar_select %p229_p7, 255, 0  ;;  %v1146_v57 = vld [vmem:[%s1002_s27 + $0x28] sm:$0xff] }
  0x16   : > { %v279_v24 = vsel %vm266_vm1, %v258_v17, %v248_v12  ;;  %v289_v25 = vsel %vm244_vm0, %v278_v21, 0.0  ;;  %v374_v31 = vadd.f32 %v999_v3, %v1011_v5  ;;  %v430_v32 = vmul.f32 %v1008_v4, %v1017_v7  ;;  %s224_s6 = scalar_select %p223_p8, %s1113_s4, 15 }
  0x17   : > { %v331_v26 = vsel %vm329_vm2, %v310_v18, %v320_v20  ;;  %v291_v29 = vsel %vm244_vm0, %v279_v24, 0.0  ;;  %v332_v30 = vsel %vm329_vm2, %v311_v19, %v321_v22  ;;  %v1093_v34 = vmul.f32 %v1025_v8, %v289_v25  ;;  %v871_v49 = vld [vmem:[%s219_s28] sm:%s870_s5]  ;;  %v874_v54 = vld [vmem:[%s219_s28 + $0x8] sm:%s870_s5]  ;;  %s818_s9 = sshll.u32 %s1657_s13, 5  ;;  %p235_p10 = scmp.lt.s32.totalorder %s1113_s4, 16 }
  0x18   : > { %v396_v35 = vmul.f32 %v1025_v8, %v291_v29  ;;  %v1098_v36 = vmul.f32 %v1030_v9, %v1011_v5  ;;  %v1106_v38 = vmul.f32 %v1041_v14, %v331_v26  ;;  %v464_v39 = vmul.f32 %v1041_v14, %v332_v30  ;;  %s824_s7 = sshll.u32 %s224_s6, 4 }
  0x19   : > { %v1110_v40 = vmul.f32 %v1046_v15, %v289_v25  ;;  %v1118_v42 = vmul.f32 %v1046_v15, %v291_v29  ;;  %v1121_v43 = vmul.f32 %v1063_v23, %v331_v26  ;;  %v1124_v44 = vmul.f32 %v1063_v23, %v332_v30  ;;  %s1179_s8 = scalar_lea.vmem %s994_s24, %s824_s7  ;;  %s817_s24 = sshll.u32 %s1661_s21, 1 }
  0x1a   : > { %v412_v41 = vadd.f32 %v396_v35, %v378_v27  ;;  %v1127_v45 = vmul.f32 %v1076_v28, %v291_v29  ;;  %v1131_v46 = vmul.f32 %v1089_v33, %v1017_v7  ;;  %v1134_v47 = vmul.f32 %v1103_v37, %v332_v30  ;;  %s192_s13 = sadd.s32 %s818_s9, %s817_s24 }
  0x1b   : > { %v341_v48 = vsel %vm329_vm2, %v320_v20, %v310_v18  ;;  %v268_v51 = vsel %vm266_vm1, %v247_v11, %v257_v13  ;;  %v269_v52 = vsel %vm266_vm1, %v248_v12, %v258_v17  ;;  %v342_v53 = vsel %vm329_vm2, %v321_v22, %v311_v19  ;;  %s819_s21 = sshll.u32 %s192_s13, 3 }
  0x1c   : > { %v446_v50 = vadd.f32 %v430_v32, %v412_v41  ;;  %v246_v55 = vrot.slane %v871_v49, 7  ;;  %v309_v56 = vrot.slane %v871_v49, 1  ;;  %v353_v58 = vsel %vm308_vm3, %v341_v48, 0.0  ;;  %s1273_s12 = scalar_lea.vmem %s1645_s3, %s819_s21 }
  0x1d   : > { %v375_v59 = vadd.f32 %v999_v3, %v1014_v6  ;;  %v256_v60 = vrot.slane %v874_v54, 7  ;;  %v319_v61 = vrot.slane %v874_v54, 1  ;;  %v426_v62 = vmul.f32 %v1008_v4, %v871_v49  ;;  %s886_s19 = scalar_select %p235_p10, 255, 0 }
  0x1e   : > { %v379_v63 = vadd.f32 %v999_v3, %v1146_v57  ;;  %v1156_v0 = vadd.f32 %v464_v39, %v446_v50  ;;  %v355_v11 = vsel %vm308_vm3, %v342_v53, 0.0  ;;  %v397_v12 = vmul.f32 %v1025_v8, %v269_v52 }
  0x1f   : > { %v431_v13 = vmul.f32 %v1008_v4, %v1033_v10  ;;  %v277_v17 = vsel %vm266_vm1, %v256_v60, %v246_v55  ;;  %v330_v18 = vsel %vm329_vm2, %v309_v56, %v319_v61  ;;  %v267_v19 = vsel %vm266_vm1, %v246_v55, %v256_v60 }
  0x20   : > { %v340_v20 = vsel %vm329_vm2, %v319_v61, %v309_v56  ;;  %v287_v21 = vsel %vm244_vm0, %v277_v17, 0.0  ;;  %v393_v24 = vmul.f32 %v1025_v8, %v267_v19  ;;  %v427_v25 = vmul.f32 %v1008_v4, %v874_v54  ;;  %v1216_v19 = vld [vmem:[%s1002_s27 + $0x30] sm:$0xff] }
  0x21   : > { %v351_v22 = vsel %vm308_vm3, %v340_v20, 0.0  ;;  %v392_v26 = vmul.f32 %v1025_v8, %v287_v21  ;;  %v460_v27 = vmul.f32 %v1041_v14, %v330_v18  ;;  %v1184_v29 = vmul.f32 %v1025_v8, %v268_v51 }
  0x22   : > { %v413_v30 = vadd.f32 %v397_v12, %v379_v63  ;;  %v409_v32 = vadd.f32 %v393_v24, %v375_v59  ;;  %v461_v35 = vmul.f32 %v1041_v14, %v351_v22  ;;  %v1188_v39 = vmul.f32 %v1041_v14, %v353_v58 }
  0x23   : > { %v465_v41 = vmul.f32 %v1041_v14, %v355_v11  ;;  %v408_v48 = vadd.f32 %v392_v26, %v374_v31  ;;  %v495_v50 = vmul.f32 %v1046_v15, %v268_v51  ;;  %v1193_v53 = vmul.f32 %v1046_v15, %v269_v52 }
  0x24   : > { %v447_v49 = vadd.f32 %v431_v13, %v413_v30  ;;  %v443_v54 = vadd.f32 %v427_v25, %v409_v32  ;;  %v529_v55 = vmul.f32 %v1030_v9, %v1014_v6  ;;  %v563_v56 = vmul.f32 %v1063_v23, %v353_v58 }
  0x25   : > { %v1204_v31 = vmul.f32 %v1063_v23, %v355_v11  ;;  %v442_v59 = vadd.f32 %v426_v62, %v408_v48  ;;  %v597_v51 = vmul.f32 %v1076_v28, %v269_v52  ;;  %v631_v60 = vmul.f32 %v1089_v33, %v1033_v10 }
  0x26   : > { %v249_v61 = vrot.slane %v1050_v16, 7  ;;  %v477_v63 = vadd.f32 %v461_v35, %v443_v54  ;;  %v259_v12 = vrot.slane %v1146_v57, 7  ;;  %v312_v13 = vrot.slane %v1050_v16, 1 }
  0x27   : > { %v322_v17 = vrot.slane %v1146_v57, 1  ;;  %v476_v58 = vadd.f32 %v460_v27, %v442_v59  ;;  %v1213_v18 = vadd.f32 %v465_v41, %v447_v49  ;;  %v376_v52 = vadd.f32 %v999_v3, %v1017_v7 }
  0x28   : > { %v428_v62 = vmul.f32 %v1008_v4, %v1011_v5  ;;  %v511_v20 = vadd.f32 %v495_v50, %v477_v63  ;;  %v280_v21 = vsel %vm266_vm1, %v259_v12, %v249_v61  ;;  %v380_v24 = vadd.f32 %v999_v3, %v1216_v19 }
  0x29   : > { %v333_v22 = vsel %vm329_vm2, %v312_v13, %v322_v17  ;;  %v510_v25 = vadd.f32 %v1110_v40, %v476_v58  ;;  %vm696_vm4 = vcmask 31744   ;;  %v665_v26 = vmul.f32 %v1103_v37, %v355_v11 }
  0x2a   : > { %v293_v5 = vsel %vm244_vm0, %v280_v21, 0.0  ;;  %v410_v27 = vadd.f32 %v1093_v34, %v376_v52  ;;  %v545_v30 = vadd.f32 %v529_v55, %v511_v20  ;;  %v432_v35 = vmul.f32 %v1008_v4, %v1050_v16 }
  0x2b   : > { %v398_v32 = vmul.f32 %v1025_v8, %v293_v5  ;;  %v466_v41 = vmul.f32 %v1041_v14, %v333_v22  ;;  %v544_v48 = vadd.f32 %v1098_v36, %v510_v25  ;;  %v498_v11 = vmul.f32 %v1046_v15, %v293_v5 }
  0x2c   : > { %v444_v40 = vadd.f32 %v428_v62, %v410_v27  ;;  %v530_v49 = vmul.f32 %v1030_v9, %v1017_v7  ;;  %v579_v50 = vadd.f32 %v563_v56, %v545_v30  ;;  %v1244_v54 = vmul.f32 %v1063_v23, %v333_v22  ;;  %v1256_v62 = vld [vmem:[%s1002_s27 + $0x38] sm:$0xff] }
  0x2d   : > { %v414_v34 = vadd.f32 %v398_v32, %v380_v24  ;;  %v598_v55 = vmul.f32 %v1076_v28, %v293_v5  ;;  %v578_v59 = vadd.f32 %v1121_v43, %v544_v48  ;;  %v270_v36 = vsel %vm266_vm1, %v249_v61, %v259_v12 }
  0x2e   : > { %v478_v63 = vadd.f32 %v1106_v38, %v444_v40  ;;  %v343_v58 = vsel %vm329_vm2, %v322_v17, %v312_v13  ;;  %v613_v52 = vadd.f32 %v597_v51, %v579_v50  ;;  %v632_v56 = vmul.f32 %v1089_v33, %v1050_v16 }
  0x2f   : > { %v448_v7 = vadd.f32 %v432_v35, %v414_v34  ;;  %v377_v20 = vadd.f32 %v999_v3, %v1033_v10  ;;  %v612_v43 = vadd.f32 %v1127_v45, %v578_v59  ;;  %v381_v61 = vadd.f32 %v999_v3, %v1256_v62 }
  0x30   : > { %v512_v38 = vadd.f32 %v1118_v42, %v478_v63  ;;  %v399_v12 = vmul.f32 %v1025_v8, %v270_v36  ;;  %v647_v13 = vadd.f32 %v631_v60, %v613_v52  ;;  %v357_v51 = vsel %vm308_vm3, %v343_v58, 0.0 }
  0x31   : > { %v411_v17 = vadd.f32 %v1184_v29, %v377_v20  ;;  %v429_v21 = vmul.f32 %v1008_v4, %v1014_v6  ;;  %v646_v42 = vadd.f32 %v1131_v46, %v612_v43  ;;  %v433_v60 = vmul.f32 %v1008_v4, %v1146_v57 }
  0x32   : > { %v546_v45 = vadd.f32 %v530_v49, %v512_v38  ;;  %v415_v24 = vadd.f32 %v399_v12, %v381_v61  ;;  %v681_v25 = vadd.f32 %v665_v26, %v647_v13  ;;  %v1278_v5 = vadd.f32 %v466_v41, %v448_v7  ;;  %v1301_v49 = vld [vmem:[%s1002_s27 + $0x40] sm:$0xff] }
  0x33   : > { %v666_v29 = vmul.f32 %v1103_v37, %v333_v22  ;;  %v445_v6 = vadd.f32 %v429_v21, %v411_v17  ;;  %v680_v27 = vadd.f32 %v1134_v47, %v646_v42  ;;  %v467_v46 = vmul.f32 %v1041_v14, %v357_v51 }
  0x34   : > { %v580_v30 = vadd.f32 %v1124_v44, %v546_v45  ;;  %v449_v32 = vadd.f32 %v433_v60, %v415_v24  ;;  %698 = vst.msk [vmem:[%s1273_s12 + $0x8] sm:$0xff] %vm696_vm4, %v681_v25  ;;  %v499_v48 = vmul.f32 %v1046_v15, %v270_v36  ;;  %v531_v26 = vmul.f32 %v1030_v9, %v1033_v10  ;;  %v1338_v45 = vld [vmem:[%s1002_s27 + $0x48] sm:$0xff] }
  0x35   : > { %v479_v35 = vadd.f32 %v1188_v39, %v445_v6  ;;  %v1291_v22 = vmul.f32 %v1063_v23, %v357_v51  ;;  %697 = vst.msk [vmem:[%s1273_s12] sm:$0xff] %vm696_vm4, %v680_v27  ;;  %v599_v44 = vmul.f32 %v1076_v28, %v270_v36  ;;  %v633_v41 = vmul.f32 %v1089_v33, %v1146_v57 }
  0x36   : > { %v614_v47 = vadd.f32 %v598_v55, %v580_v30  ;;  %v250_v40 = vrot.slane %v1216_v19, 7  ;;  %v260_v50 = vrot.slane %v1256_v62, 7  ;;  %v313_v10 = vrot.slane %v1216_v19, 1 }
  0x37   : > { %v513_v39 = vadd.f32 %v1193_v53, %v479_v35  ;;  %v323_v34 = vrot.slane %v1256_v62, 1  ;;  %v1306_v55 = vadd.f32 %v467_v46, %v449_v32  ;;  %v382_v63 = vadd.f32 %v999_v3, %v1301_v49 }
  0x38   : > { %v648_v59 = vadd.f32 %v632_v56, %v614_v47  ;;  %v514_v36 = vadd.f32 %v498_v11, %v1156_v0  ;;  %v281_v53 = vsel %vm266_vm1, %v260_v50, %v250_v40  ;;  %v532_v7 = vmul.f32 %v1030_v9, %v1050_v16 }
  0x39   : > { %v547_v58 = vadd.f32 %v531_v26, %v513_v39  ;;  %v334_v52 = vsel %vm329_vm2, %v313_v10, %v323_v34  ;;  %v667_v20 = vmul.f32 %v1103_v37, %v357_v51  ;;  %v295_v43 = vsel %vm244_vm0, %v281_v53, 0.0  ;;  %v1370_v53 = vld [vmem:[%s1002_s27 + $0x50] sm:$0xff] }
  0x3a   : > { %v682_v56 = vadd.f32 %v666_v29, %v648_v59  ;;  %v434_v0 = vmul.f32 %v1008_v4, %v1216_v19  ;;  %v400_v38 = vmul.f32 %v1025_v8, %v295_v43  ;;  %v468_v61 = vmul.f32 %v1041_v14, %v334_v52 }
  0x3b   : > { %v581_v11 = vadd.f32 %v1204_v31, %v547_v58  ;;  %v548_v12 = vadd.f32 %v532_v7, %v514_v36  ;;  %v1328_v16 = vmul.f32 %v1063_v23, %v334_v52  ;;  %v600_v13 = vmul.f32 %v1076_v28, %v295_v43 }
  0x3c   : > { %699 = vst.msk [vmem:[%s1273_s12 + $0x10] sm:$0xff] %vm696_vm4, %v682_v56  ;;  %v634_v51 = vmul.f32 %v1089_v33, %v1216_v19  ;;  %v271_v17 = vsel %vm266_vm1, %v250_v40, %v260_v50  ;;  %v416_v21 = vadd.f32 %v400_v38, %v382_v63  ;;  %v344_v24 = vsel %vm329_vm2, %v323_v34, %v313_v10 }
  0x3d   : > { %v615_v31 = vadd.f32 %v599_v44, %v581_v11  ;;  %v582_v42 = vadd.f32 %v1244_v54, %v548_v12  ;;  %v668_v60 = vmul.f32 %v1103_v37, %v334_v52  ;;  %v359_v25 = vsel %vm308_vm3, %v344_v24, 0.0 }
  0x3e   : > { %v383_v29 = vadd.f32 %v999_v3, %v1338_v45  ;;  %v401_v6 = vmul.f32 %v1025_v8, %v271_v17  ;;  %v450_v30 = vadd.f32 %v434_v0, %v416_v21  ;;  %v435_v54 = vmul.f32 %v1008_v4, %v1256_v62 }
  0x3f   : > { %v649_v27 = vadd.f32 %v633_v41, %v615_v31  ;;  %v616_v32 = vadd.f32 %v600_v13, %v582_v42  ;;  %v500_v46 = vmul.f32 %v1046_v15, %v295_v43  ;;  %v515_v26 = vadd.f32 %v499_v48, %v1213_v18 }
  0x40   : > { %v417_v35 = vadd.f32 %v401_v6, %v383_v29  ;;  %v533_v47 = vmul.f32 %v1030_v9, %v1146_v57  ;;  %v469_v39 = vmul.f32 %v1041_v14, %v359_v25  ;;  %v501_v41 = vmul.f32 %v1046_v15, %v271_v17 }
  0x41   : > { %v683_v44 = vadd.f32 %v667_v20, %v649_v27  ;;  %v650_v40 = vadd.f32 %v634_v51, %v616_v32  ;;  %v1356_v50 = vadd.f32 %v468_v61, %v450_v30  ;;  %v1359_v34 = vmul.f32 %v1063_v23, %v359_v25 }
  0x42   : > { %v549_v10 = vadd.f32 %v533_v47, %v515_v26  ;;  %v601_v59 = vmul.f32 %v1076_v28, %v271_v17  ;;  %v451_v57 = vadd.f32 %v435_v54, %v417_v35  ;;  %v251_v48 = vrot.slane %v1301_v49, 7 }
  0x43   : > { %700 = vst.msk [vmem:[%s1273_s12 + $0x18] sm:$0xff] %vm696_vm4, %v683_v44  ;;  %v684_v18 = vadd.f32 %v668_v60, %v650_v40  ;;  %v261_v63 = vrot.slane %v1338_v45, 7  ;;  %v635_v58 = vmul.f32 %v1089_v33, %v1256_v62  ;;  %v314_v52 = vrot.slane %v1301_v49, 1  ;;  %v1401_v60 = vld [vmem:[%s1002_s27 + $0x58] sm:$0xff] }
  0x44   : > { %v583_v36 = vadd.f32 %v1291_v22, %v549_v10  ;;  %v324_v7 = vrot.slane %v1338_v45, 1  ;;  %v669_v56 = vmul.f32 %v1103_v37, %v359_v25  ;;  %v384_v22 = vadd.f32 %v999_v3, %v1370_v53 }
  0x45   : > { %701 = vst.msk [vmem:[%s1273_s12 + $0x20] sm:$0xff] %vm696_vm4, %v684_v18  ;;  %v282_v20 = vsel %vm266_vm1, %v261_v63, %v251_v48  ;;  %v516_v43 = vadd.f32 %v500_v46, %v1278_v5  ;;  %v534_v61 = vmul.f32 %v1030_v9, %v1216_v19  ;;  %v1388_v12 = vadd.f32 %v469_v39, %v451_v57  ;;  %v1427_v57 = vld [vmem:[%s1179_s8] sm:%s886_s19] }
  0x46   : > { %v617_v0 = vadd.f32 %v601_v59, %v583_v36  ;;  %v297_v11 = vsel %vm244_vm0, %v282_v20, 0.0  ;;  %v335_v38 = vsel %vm329_vm2, %v314_v52, %v324_v7  ;;  %v436_v51 = vmul.f32 %v1008_v4, %v1301_v49 }
  0x47   : > { %v402_v13 = vmul.f32 %v1025_v8, %v297_v11  ;;  %v470_v5 = vmul.f32 %v1041_v14, %v335_v38  ;;  %v502_v31 = vmul.f32 %v1046_v15, %v297_v11  ;;  %v550_v21 = vadd.f32 %v534_v61, %v516_v43  ;;  %v1441_v43 = vld [vmem:[%s1002_s27 + $0x60] sm:$0xff] }
  0x48   : > { %v651_v17 = vadd.f32 %v635_v58, %v617_v0  ;;  %v602_v42 = vmul.f32 %v1076_v28, %v297_v11  ;;  %v636_v19 = vmul.f32 %v1089_v33, %v1301_v49  ;;  %v272_v25 = vsel %vm266_vm1, %v251_v48, %v261_v63  ;;  %v1430_v48 = vld [vmem:[%s1179_s8 + $0x8] sm:%s886_s19] }
  0x49   : > { %v418_v24 = vadd.f32 %v402_v13, %v384_v22  ;;  %v345_v29 = vsel %vm329_vm2, %v324_v7, %v314_v52  ;;  %v584_v27 = vadd.f32 %v1328_v16, %v550_v21  ;;  %v385_v32 = vadd.f32 %v999_v3, %v1401_v60 }
  0x4a   : > { %v685_v6 = vadd.f32 %v669_v56, %v651_v17  ;;  %v361_v30 = vsel %vm308_vm3, %v345_v29, 0.0  ;;  %v570_v46 = vmul.f32 %v1063_v23, %v335_v38  ;;  %v403_v35 = vmul.f32 %v1025_v8, %v272_v25 }
  0x4b   : > { %v452_v54 = vadd.f32 %v436_v51, %v418_v24  ;;  %v437_v26 = vmul.f32 %v1008_v4, %v1338_v45  ;;  %v618_v47 = vadd.f32 %v602_v42, %v584_v27  ;;  %v670_v16 = vmul.f32 %v1103_v37, %v335_v38  ;;  %v1469_v27 = vld [vmem:[%s1002_s27 + $0x68] sm:$0xff] }
  0x4c   : > { %702 = vst.msk [vmem:[%s1273_s12 + $0x28] sm:$0xff] %vm696_vm4, %v685_v6  ;;  %v517_v44 = vadd.f32 %v501_v41, %v1306_v55  ;;  %v535_v40 = vmul.f32 %v1030_v9, %v1256_v62  ;;  %v419_v10 = vadd.f32 %v403_v35, %v385_v32  ;;  %v471_v59 = vmul.f32 %v1041_v14, %v361_v30 }
  0x4d   : > { %v1422_v39 = vadd.f32 %v470_v5, %v452_v54  ;;  %v503_v18 = vmul.f32 %v1046_v15, %v272_v25  ;;  %v652_v63 = vadd.f32 %v636_v19, %v618_v47  ;;  %v571_v55 = vmul.f32 %v1063_v23, %v361_v30 }
  0x4e   : > { %v551_v36 = vadd.f32 %v535_v40, %v517_v44  ;;  %v603_v41 = vmul.f32 %v1076_v28, %v272_v25  ;;  %v453_v62 = vadd.f32 %v437_v26, %v419_v10  ;;  %v252_v58 = vrot.slane %v1370_v53, 7 }
  0x4f   : > { %v262_v52 = vrot.slane %v1401_v60, 7  ;;  %v315_v7 = vrot.slane %v1370_v53, 1  ;;  %v686_v56 = vadd.f32 %v670_v16, %v652_v63  ;;  %v637_v22 = vmul.f32 %v1089_v33, %v1338_v45 }
  0x50   : > { %v585_v20 = vadd.f32 %v1359_v34, %v551_v36  ;;  %v325_v0 = vrot.slane %v1401_v60, 1  ;;  %v671_v11 = vmul.f32 %v1103_v37, %v361_v30  ;;  %v386_v61 = vadd.f32 %v999_v3, %v1441_v43 }
  0x51   : > { %v283_v38 = vsel %vm266_vm1, %v262_v52, %v252_v58  ;;  %v518_v13 = vadd.f32 %v502_v31, %v1356_v50  ;;  %703 = vst.msk [vmem:[%s1273_s12 + $0x30] sm:$0xff] %vm696_vm4, %v686_v56  ;;  %v536_v17 = vmul.f32 %v1030_v9, %v1301_v49  ;;  %v1458_v21 = vadd.f32 %v471_v59, %v453_v62 }
  0x52   : > { %v619_v34 = vadd.f32 %v603_v41, %v585_v20  ;;  %v299_v51 = vsel %vm244_vm0, %v283_v38, 0.0  ;;  %v336_v5 = vsel %vm329_vm2, %v315_v7, %v325_v0  ;;  %v438_v50 = vmul.f32 %v1008_v4, %v1370_v53 }
  0x53   : > { %v404_v42 = vmul.f32 %v1025_v8, %v299_v51  ;;  %v472_v31 = vmul.f32 %v1041_v14, %v336_v5  ;;  %v504_v19 = vmul.f32 %v1046_v15, %v299_v51  ;;  %v552_v25 = vadd.f32 %v536_v17, %v518_v13 }
  0x54   : > { %v653_v24 = vadd.f32 %v637_v22, %v619_v34  ;;  %v604_v29 = vmul.f32 %v1076_v28, %v299_v51  ;;  %v638_v49 = vmul.f32 %v1089_v33, %v1370_v53  ;;  %v273_v30 = vsel %vm266_vm1, %v252_v58, %v262_v52 }
  0x55   : > { %v420_v6 = vadd.f32 %v404_v42, %v386_v61  ;;  %v346_v32 = vsel %vm329_vm2, %v325_v0, %v315_v7  ;;  %v586_v35 = vadd.f32 %v570_v46, %v552_v25  ;;  %v387_v47 = vadd.f32 %v999_v3, %v1469_v27  ;;  %v1496_v0 = vld [vmem:[%s1002_s27 + $0x70] sm:$0xff] }
  0x56   : > { %v687_v54 = vadd.f32 %v671_v11, %v653_v24  ;;  %v363_v26 = vsel %vm308_vm3, %v346_v32, 0.0  ;;  %v572_v44 = vmul.f32 %v1063_v23, %v336_v5  ;;  %v405_v40 = vmul.f32 %v1025_v8, %v273_v30 }
  0x57   : > { %v454_v16 = vadd.f32 %v438_v50, %v420_v6  ;;  %v439_v10 = vmul.f32 %v1008_v4, %v1401_v60  ;;  %v620_v59 = vadd.f32 %v604_v29, %v586_v35  ;;  %v672_v46 = vmul.f32 %v1103_v37, %v336_v5 }
  0x58   : > { %704 = vst.msk [vmem:[%s1273_s12 + $0x38] sm:$0xff] %vm696_vm4, %v687_v54  ;;  %v519_v63 = vadd.f32 %v503_v18, %v1388_v12  ;;  %v537_v36 = vmul.f32 %v1030_v9, %v1338_v45  ;;  %v421_v62 = vadd.f32 %v405_v40, %v387_v47  ;;  %v473_v58 = vmul.f32 %v1041_v14, %v363_v26 }
  0x59   : > { %v1489_v41 = vadd.f32 %v472_v31, %v454_v16  ;;  %v505_v52 = vmul.f32 %v1046_v15, %v273_v30  ;;  %v654_v7 = vadd.f32 %v638_v49, %v620_v59  ;;  %v573_v20 = vmul.f32 %v1063_v23, %v363_v26 }
  0x5a   : > { %v553_v56 = vadd.f32 %v537_v36, %v519_v63  ;;  %v605_v22 = vmul.f32 %v1076_v28, %v273_v30  ;;  %v455_v12 = vadd.f32 %v439_v10, %v421_v62  ;;  %v253_v18 = vrot.slane %v1441_v43, 7 }
  0x5b   : > { %v263_v45 = vrot.slane %v1469_v27, 7  ;;  %v316_v11 = vrot.slane %v1441_v43, 1  ;;  %v688_v38 = vadd.f32 %v672_v46, %v654_v7  ;;  %v639_v13 = vmul.f32 %v1089_v33, %v1401_v60 }
  0x5c   : > { %v587_v61 = vadd.f32 %v571_v55, %v553_v56  ;;  %v326_v34 = vrot.slane %v1469_v27, 1  ;;  %v673_v51 = vmul.f32 %v1103_v37, %v363_v26  ;;  %v388_v17 = vadd.f32 %v999_v3, %v1496_v0 }
  0x5d   : > { %v284_v5 = vsel %vm266_vm1, %v263_v45, %v253_v18  ;;  %v520_v42 = vadd.f32 %v504_v19, %v1422_v39  ;;  %705 = vst.msk [vmem:[%s1273_s12 + $0x40] sm:$0xff] %vm696_vm4, %v688_v38  ;;  %v538_v24 = vmul.f32 %v1030_v9, %v1370_v53  ;;  %v489_v25 = vadd.f32 %v473_v58, %v455_v12  ;;  %v1523_v19 = vld [vmem:[%s1002_s27 + $0x78] sm:$0xff] }
  0x5e   : > { %v621_v50 = vadd.f32 %v605_v22, %v587_v61  ;;  %v301_v55 = vsel %vm244_vm0, %v284_v5, 0.0  ;;  %v337_v31 = vsel %vm329_vm2, %v316_v11, %v326_v34  ;;  %v440_v6 = vmul.f32 %v1008_v4, %v1441_v43 }
  0x5f   : > { %v406_v29 = vmul.f32 %v1025_v8, %v301_v55  ;;  %v474_v39 = vmul.f32 %v1041_v14, %v337_v31  ;;  %v506_v30 = vmul.f32 %v1046_v15, %v301_v55  ;;  %v554_v32 = vadd.f32 %v538_v24, %v520_v42 }
  0x60   : > { %v655_v49 = vadd.f32 %v639_v13, %v621_v50  ;;  %v606_v54 = vmul.f32 %v1076_v28, %v301_v55  ;;  %v640_v53 = vmul.f32 %v1089_v33, %v1441_v43  ;;  %v274_v26 = vsel %vm266_vm1, %v253_v18, %v263_v45 }
  0x61   : > { %v422_v35 = vadd.f32 %v406_v29, %v388_v17  ;;  %v347_v47 = vsel %vm329_vm2, %v326_v34, %v316_v11  ;;  %v588_v40 = vadd.f32 %v572_v44, %v554_v32  ;;  %v389_v59 = vadd.f32 %v999_v3, %v1523_v19 }
  0x62   : > { %v689_v16 = vadd.f32 %v673_v51, %v655_v49  ;;  %v365_v10 = vsel %vm308_vm3, %v347_v47, 0.0  ;;  %v574_v63 = vmul.f32 %v1063_v23, %v337_v31  ;;  %v407_v36 = vmul.f32 %v1025_v8, %v274_v26 }
  0x63   : > { %v456_v46 = vadd.f32 %v440_v6, %v422_v35  ;;  %v441_v62 = vmul.f32 %v1008_v4, %v1469_v27  ;;  %v622_v58 = vadd.f32 %v606_v54, %v588_v40  ;;  %v674_v7 = vmul.f32 %v1103_v37, %v337_v31 }
  0x64   : > { %706 = vst.msk [vmem:[%s1273_s12 + $0x48] sm:$0xff] %vm696_vm4, %v689_v16  ;;  %v521_v44 = vadd.f32 %v505_v52, %v1458_v21  ;;  %v539_v56 = vmul.f32 %v1030_v9, %v1401_v60  ;;  %v423_v3 = vadd.f32 %v407_v36, %v389_v59  ;;  %v475_v12 = vmul.f32 %v1041_v14, %v365_v10 }
  0x65   : > { %v490_v22 = vadd.f32 %v474_v39, %v456_v46  ;;  %v507_v18 = vmul.f32 %v1046_v15, %v274_v26  ;;  %v656_v8 = vadd.f32 %v640_v53, %v622_v58  ;;  %v607_v4 = vmul.f32 %v1076_v28, %v274_v26 }
  0x66   : > { %v555_v45 = vadd.f32 %v539_v56, %v521_v44  ;;  %v641_v11 = vmul.f32 %v1089_v33, %v1469_v27  ;;  %v457_v38 = vadd.f32 %v441_v62, %v423_v3  ;;  %v254_v21 = vrot.slane %v1496_v0, 7 }
  0x67   : > { %v264_v52 = vrot.slane %v1523_v19, 7  ;;  %v317_v60 = vrot.slane %v1496_v0, 1  ;;  %v690_v61 = vadd.f32 %v674_v7, %v656_v8  ;;  %v327_v14 = vrot.slane %v1523_v19, 1 }
  0x68   : > { %v589_v13 = vadd.f32 %v573_v20, %v555_v45  ;;  %v522_v34 = vadd.f32 %v506_v30, %v1489_v41  ;;  %v575_v51 = vmul.f32 %v1063_v23, %v365_v10  ;;  %v675_v5 = vmul.f32 %v1103_v37, %v365_v10 }
  0x69   : > { %v285_v17 = vsel %vm266_vm1, %v264_v52, %v254_v21  ;;  %v540_v42 = vmul.f32 %v1030_v9, %v1441_v43  ;;  %707 = vst.msk [vmem:[%s1273_s12 + $0x50] sm:$0xff] %vm696_vm4, %v690_v61  ;;  %v491_v50 = vadd.f32 %v475_v12, %v457_v38  ;;  %v338_v41 = vsel %vm329_vm2, %v317_v60, %v327_v14 }
  0x6a   : > { %v623_v55 = vadd.f32 %v607_v4, %v589_v13  ;;  %v303_v20 = vsel %vm244_vm0, %v285_v17, 0.0  ;;  %v642_v29 = vmul.f32 %v1089_v33, %v1496_v0  ;;  %v275_v6 = vsel %vm266_vm1, %v254_v21, %v264_v52 }
  0x6b   : > { %v556_v31 = vadd.f32 %v540_v42, %v522_v34  ;;  %v608_v24 = vmul.f32 %v1076_v28, %v303_v20  ;;  %v508_v39 = vmul.f32 %v1046_v15, %v303_v20  ;;  %v576_v49 = vmul.f32 %v1063_v23, %v338_v41 }
  0x6c   : > { %v657_v43 = vadd.f32 %v641_v11, %v623_v55  ;;  %v348_v30 = vsel %vm329_vm2, %v327_v14, %v317_v60  ;;  %v676_v54 = vmul.f32 %v1103_v37, %v338_v41  ;;  %v523_v35 = vadd.f32 %v507_v18, %v489_v25 }
  0x6d   : > { %v590_v32 = vadd.f32 %v574_v63, %v556_v31  ;;  %v541_v53 = vmul.f32 %v1030_v9, %v1469_v27  ;;  %v367_v47 = vsel %vm308_vm3, %v348_v30, 0.0  ;;  %v509_v16 = vmul.f32 %v1046_v15, %v275_v6 }
  0x6e   : > { %v691_v26 = vadd.f32 %v675_v5, %v657_v43  ;;  %v609_v40 = vmul.f32 %v1076_v28, %v275_v6  ;;  %v643_v46 = vmul.f32 %v1089_v33, %v1523_v19  ;;  %v255_v25 = vrot.slane %v1427_v57, 7 }
  0x6f   : > { %v624_v10 = vadd.f32 %v608_v24, %v590_v32  ;;  %v557_v59 = vadd.f32 %v541_v53, %v523_v35  ;;  %v265_v63 = vrot.slane %v1430_v48, 7  ;;  %v318_v27 = vrot.slane %v1427_v57, 1 }
  0x70   : > { %708 = vst.msk [vmem:[%s1273_s12 + $0x58] sm:$0xff] %vm696_vm4, %v691_v26  ;;  %v328_v15 = vrot.slane %v1430_v48, 1  ;;  %v524_v58 = vadd.f32 %v508_v39, %v490_v22  ;;  %v677_v7 = vmul.f32 %v1103_v37, %v367_v47  ;;  %v542_v56 = vmul.f32 %v1030_v9, %v1496_v0 }
  0x71   : > { %v658_v36 = vadd.f32 %v642_v29, %v624_v10  ;;  %v591_v62 = vadd.f32 %v575_v51, %v557_v59  ;;  %v286_v44 = vsel %vm266_vm1, %v265_v63, %v255_v25  ;;  %v276_v3 = vsel %vm266_vm1, %v255_v25, %v265_v63 }
  0x72   : > { %v305_v8 = vsel %vm244_vm0, %v286_v44, 0.0  ;;  %v339_v45 = vsel %vm329_vm2, %v318_v27, %v328_v15  ;;  %v558_v22 = vadd.f32 %v542_v56, %v524_v58  ;;  %v349_v11 = vsel %vm329_vm2, %v328_v15, %v318_v27 }
  0x73   : > { %v692_v12 = vadd.f32 %v676_v54, %v658_v36  ;;  %v625_v18 = vadd.f32 %v609_v40, %v591_v62  ;;  %v610_v4 = vmul.f32 %v1076_v28, %v305_v8  ;;  %v577_v0 = vmul.f32 %v1063_v23, %v367_v47 }
  0x74   : > { %v525_v21 = vadd.f32 %v509_v16, %v491_v50  ;;  %v543_v52 = vmul.f32 %v1030_v9, %v1523_v19  ;;  %v592_v60 = vadd.f32 %v576_v49, %v558_v22  ;;  %v644_v61 = vmul.f32 %v1427_v57, %v1089_v33 }
  0x75   : > { %709 = vst.msk [vmem:[%s1273_s12 + $0x60] sm:$0xff] %vm696_vm4, %v692_v12  ;;  %v659_v38 = vadd.f32 %v643_v46, %v625_v18  ;;  %v611_v1 = vmul.f32 %v1076_v28, %v276_v3  ;;  %v678_v51 = vmul.f32 %v1103_v37, %v339_v45  ;;  %v369_v23 = vsel %vm308_vm3, %v349_v11, 0.0 }
  0x76   : > { %v559_v14 = vadd.f32 %v543_v52, %v525_v21  ;;  %v626_v34 = vadd.f32 %v610_v4, %v592_v60  ;;  %v645_v9 = vmul.f32 %v1430_v48, %v1089_v33  ;;  %v679_v57 = vmul.f32 %v1103_v37, %v369_v23 }
  0x77   : > { %v693_v13 = vadd.f32 %v677_v7, %v659_v38 }
  0x78   : > { %v593_v5 = vadd.f32 %v577_v0, %v559_v14  ;;  %v660_v19 = vadd.f32 %v644_v61, %v626_v34 }
  0x79   : > { %710 = vst.msk [vmem:[%s1273_s12 + $0x68] sm:$0xff] %vm696_vm4, %v693_v13 }
  0x7a   : > { %v627_v17 = vadd.f32 %v611_v1, %v593_v5  ;;  %v694_v42 = vadd.f32 %v678_v51, %v660_v19 }
  0x7c   : > { %v661_v50 = vadd.f32 %v645_v9, %v627_v17  ;;  %711 = vst.msk [vmem:[%s1273_s12 + $0x70] sm:$0xff] %vm696_vm4, %v694_v42 }
  0x7e   : > { %v695_v28 = vadd.f32 %v679_v57, %v661_v50 }
  0x80   : > { %712 = vst.msk [vmem:[%s1273_s12 + $0x78] sm:$0xff] %vm696_vm4, %v695_v28 }
  0x81 PF: > { %s13_s16 = sadd.s32 1, %s929_s16   ;;  %s1646_s12 = smov %s921_s14 }
  0x82   : > { %p10_p11 = scmp.ge.s32.totalorder %s13_s16, 6   ;;  %s1647_s13 = smov %s925_s15 }
  0x83   : > { %s1648_s14 = smov %s1651_s17  ;;  %s1649_s15 = smov %s1655_s18 }
  0x84   :  { %12 = sbr.rel (!%p10_p11) target bundleno = 3 (0x3), region = 65 }

</bundles_post_ra>
